<compile_context>
chip_gen: v7x
topology: tpu7x:2x2x1
jax: 0.10.0
libtpu: 0.0.40
codegen_flags: <defaults>
</compile_context>

<pallas_src>
import jax
import jax.numpy as jnp
from jax.experimental import pallas as pl
from jax.experimental.pallas import tpu as pltpu

_LANES = 128                              # lane (fast) axis width
_TARGET_TILE_BYTES = 4 * 1024 * 1024      # ~4 MiB per tile buffer
_SMALL_ROWS = 1024                        # single-block shortcut threshold
_VMEM_LIMIT_BYTES = 32 * 1024 * 1024      # 3 arrays x 2 bufs x 4 MiB = 24 MiB (+scratch)


def _cadd_kernel(a_ref, b_ref, o_ref):
    # Elementwise complex add: real and imag components are both just added.
    o_ref[...] = a_ref[...] + b_ref[...]


def _round_up(x: int, m: int) -> int:
    return ((x + m - 1) // m) * m


def cmplx_add(input0: jax.Array, input1: jax.Array) -> jax.Array:
    """Complex addition of two tensors with trailing (real, imag) dim of 2."""
    assert input0.shape == input1.shape, "inputs must have identical shapes"
    assert input0.dtype == input1.dtype, "inputs must have identical dtypes"
    assert input0.shape[-1] == 2, "last dim must be 2 (real, imag)"
    orig_shape = input0.shape
    dtype = input0.dtype

    total = 1
    for s in orig_shape:
        total *= s

    if total % _LANES != 0:
        # Rare misaligned case: the old pad+slice path copied both inputs and
        # the output end-to-end (~3x HBM traffic).  A plain XLA add is already
        # bandwidth-optimal here, so just fall back.
        return input0 + input1

    rows = total // _LANES
    a2d = jnp.ravel(input0).reshape(rows, _LANES)
    b2d = jnp.ravel(input1).reshape(rows, _LANES)

    # ~4 MiB per tile buffer, scaled by dtype width (8192 rows f32, 16384 bf16).
    itemsize = jnp.dtype(dtype).itemsize
    target_rows = max(8, _TARGET_TILE_BYTES // (_LANES * itemsize))

    if rows <= _SMALL_ROWS:
        # Truly tiny input: single full-slab block, no grid-step overhead.
        # block_shape == full array dims, so (8,128) divisibility is waived.
        tile_rows = rows
        grid = (1,)
    else:
        # Emit at least ~4 grid steps (pipeline overlap + megacore sharding),
        # capped at ~4 MiB/tile; tile rows kept a multiple of 8 (sublane).
        # cdiv grid lets Pallas mask the ragged final block instead of us
        # padding the whole array in HBM.
        tile_rows = min(target_rows, _round_up(pl.cdiv(rows, 4), 8))
        grid = (pl.cdiv(rows, tile_rows),)

    out2d = pl.pallas_call(
        _cadd_kernel,
        out_shape=jax.ShapeDtypeStruct((rows, _LANES), dtype),
        grid_spec=pltpu.PrefetchScalarGridSpec(
            num_scalar_prefetch=0,
            grid=grid,
            in_specs=[
                pl.BlockSpec((tile_rows, _LANES), lambda i: (i, 0)),
                pl.BlockSpec((tile_rows, _LANES), lambda i: (i, 0)),
            ],
            out_specs=pl.BlockSpec((tile_rows, _LANES), lambda i: (i, 0)),
        ),
        compiler_params=pltpu.CompilerParams(
            dimension_semantics=("parallel",),
            vmem_limit_bytes=_VMEM_LIMIT_BYTES,
        ),
    )(a2d, b2d)

    return out2d.reshape(orig_shape)


if __name__ == "__main__":
    key = jax.random.PRNGKey(0)
    k0, k1, k2, k3 = jax.random.split(key, 4)

    # Small complex tensors: (batch=2, channels=4, H=16, W=16, 2[real,imag]).
    # total = 4096 -> 32 rows -> single-block path.
    shape_small = (2, 4, 16, 16, 2)
    a_s = jax.random.normal(k0, shape_small, dtype=jnp.float32)
    b_s = jax.random.normal(k1, shape_small, dtype=jnp.float32)
    out_s = jax.block_until_ready(cmplx_add(a_s, b_s))
    assert out_s.shape == shape_small
    assert jnp.allclose(out_s, a_s + b_s, atol=1e-6), "small-path mismatch"

    # Medium tensor to exercise the tiled (multi-grid-step) path:
    # total = 262144 -> 2048 rows -> 512-row tiles, 4 grid steps.
    shape_med = (4, 8, 64, 64, 2)
    a_m = jax.random.normal(k2, shape_med, dtype=jnp.float32)
    b_m = jax.random.normal(k3, shape_med, dtype=jnp.float32)
    out_m = jax.block_until_ready(cmplx_add(a_m, b_m))
    assert out_m.shape == shape_med
    assert jnp.allclose(out_m, a_m + b_m, atol=1e-6), "tiled-path mismatch"

    # Misaligned total (30 elements): falls back to plain XLA add.
    shape_odd = (3, 5, 2)
    a_o = jax.random.normal(k0, shape_odd, dtype=jnp.float32)
    b_o = jax.random.normal(k1, shape_odd, dtype=jnp.float32)
    out_o = jax.block_until_ready(cmplx_add(a_o, b_o))
    assert jnp.allclose(out_o, a_o + b_o, atol=1e-6), "fallback-path mismatch"

    print("KERNEL_OK")
</pallas_src>

<mosaic_0001>
module attributes {stable_mosaic.version = 11 : i64} {
  func.func @_cadd_kernel(%arg0: i32, %arg1: memref<32x128xf32, #tpu.memory_space<vmem>>, %arg2: memref<32x128xf32, #tpu.memory_space<vmem>>, %arg3: memref<32x128xf32, #tpu.memory_space<vmem>>) attributes {dimension_semantics = [#tpu.dimension_semantics<parallel>], iteration_bounds = array<i64: 1>, scalar_prefetch = 0 : i64, scratch_operands = 0 : i64, tpu.core_type = #tpu.core_type<tc>, window_params = [{transform_indices = @transform_0, window_bounds = array<i64: 32, 128>}, {transform_indices = @transform_1, window_bounds = array<i64: 32, 128>}, {transform_indices = @transform_2, window_bounds = array<i64: 32, 128>}]} {
    %c0 = arith.constant 0 : index
    %c0_0 = arith.constant 0 : index
    %0 = vector.load %arg1[%c0, %c0_0] : memref<32x128xf32, #tpu.memory_space<vmem>>, vector<32x128xf32>
    %c0_1 = arith.constant 0 : index
    %c0_2 = arith.constant 0 : index
    %1 = vector.load %arg2[%c0_1, %c0_2] : memref<32x128xf32, #tpu.memory_space<vmem>>, vector<32x128xf32>
    %2 = arith.addf %0, %1 : vector<32x128xf32>
    %c0_3 = arith.constant 0 : index
    %c0_4 = arith.constant 0 : index
    %3 = vector.load %arg3[%c0_3, %c0_4] : memref<32x128xf32, #tpu.memory_space<vmem>>, vector<32x128xf32>
    tpu.vector_store %arg3[%c0_3, %c0_4], %2 {strides = array<i32>} : memref<32x128xf32, #tpu.memory_space<vmem>>, vector<32x128xf32>,
    return
  }
  func.func @transform_0(%arg0: i32) -> (i32, i32) {
    %c0_i32 = arith.constant 0 : i32
    %c0_i32_0 = arith.constant 0 : i32
    return %arg0, %c0_i32 : i32, i32
  }
  func.func @transform_1(%arg0: i32) -> (i32, i32) {
    %c0_i32 = arith.constant 0 : i32
    %c0_i32_0 = arith.constant 0 : i32
    return %arg0, %c0_i32 : i32, i32
  }
  func.func @transform_2(%arg0: i32) -> (i32, i32) {
    %c0_i32 = arith.constant 0 : i32
    %c0_i32_0 = arith.constant 0 : i32
    return %arg0, %c0_i32 : i32, i32
  }
}

</mosaic_0001>

<bundles_post_ra>
// kernel: tpu_custom_call.1
= control target key start
LH: loop header
LB: loop body
LE: loop exit
PB: predicated region body
PF: predicated region fallthrough
CT: control target
= control target key end

     0   :  { %7 = vsyncpa [#allocation3], 0  ;;  %s216_s0 = inlined_call_operand.hbm [shape: f32[32,128], index: 0, kind: input, shape index: {}]   ;;  %s217_s1 = inlined_call_operand.hbm [shape: f32[32,128], index: 1, kind: input, shape index: {}]   ;;  %s218_s2 = inlined_call_operand.hbm [shape: f32[32,128], index: 2, kind: output, shape index: {}]  }
   0x1   :  { %8 = vsyncpa [#allocation6], 0 }
   0x2   :  { %9 = vsyncpa [#allocation4], 0  ;;  %s151_s9 = smov [#allocation2]   ;;  %s79_s13 = scalar_lea.hbm %s216_s0, 512 }
   0x3   :  { %s15_s10 = sshll.u32 %s151_s9, 4  ;;  %p80_p0 = scmp.ne.s32.totalorder %s216_s0, %s79_s13  ;;  %s16_s10 = int_to_ptr.vmem [resolvable:$true] %s15_s10 }
   0x4   :  { %p83_p1 = scmp.lt.u32.totalorder %s79_s13, %s216_s0 }
   0x6   :  { %p85_p2 = pnand %p83_p1, %p80_p0 }
   0x8   :  { %88 = shalt.err (!%p85_p2)
}
   0x9   :  { %s89_s18 = scalar_lea.vmem %s16_s10, 512  ;;  %p94_p4 = scmp.lt.s32.totalorder %s16_s10, %s16_s10 }
   0xa   :  { %p90_p3 = scmp.ne.s32.totalorder %s16_s10, %s89_s18  ;;  %p95_p5 = scmp.lt.s32.totalorder %s89_s18, %s89_s18 }
   0xc   :  { %p96_p6 = por %p95_p5, %p94_p4 }
   0xe   :  { %p97_p7 = pnand %p96_p6, %p90_p3 }
  0x10   :  { %100 = shalt.err (!%p97_p7)
}
  0x11   :  { %s152_s19 = smov 128   ;;  %s153_s20 = smov 8  }
  0x12   :  { %21 = dma.hbm_to_vmem [thread:$0]  %s216_s0, 512, %s16_s10, [#allocation3], %s152_s19, %s152_s19, %s153_s20  }
  0x13   :  { %s154_s23 = smov [#allocation5]   ;;  %s101_s27 = scalar_lea.hbm %s217_s1, 512 }
  0x14   :  { %s27_s24 = sshll.u32 %s154_s23, 4  ;;  %p102_p8 = scmp.ne.s32.totalorder %s217_s1, %s101_s27  ;;  %s28_s24 = int_to_ptr.vmem [resolvable:$true] %s27_s24 }
  0x15   :  { %p105_p9 = scmp.lt.u32.totalorder %s101_s27, %s217_s1 }
  0x17   :  { %p107_p10 = pnand %p105_p9, %p102_p8 }
  0x19   :  { %110 = shalt.err (!%p107_p10)
}
  0x1a   :  { %s111_s4 = scalar_lea.vmem %s28_s24, 512  ;;  %p116_p12 = scmp.lt.s32.totalorder %s28_s24, %s28_s24 }
  0x1b   :  { %p112_p11 = scmp.ne.s32.totalorder %s28_s24, %s111_s4  ;;  %p117_p13 = scmp.lt.s32.totalorder %s111_s4, %s111_s4 }
  0x1d   :  { %p118_p0 = por %p117_p13, %p116_p12 }
  0x1f   :  { %p119_p1 = pnand %p118_p0, %p112_p11 }
  0x21   :  { %122 = shalt.err (!%p119_p1)
}
  0x22   :  { %33 = dma.hbm_to_vmem [thread:$0]  %s217_s1, 512, %s28_s24, [#allocation6], %s152_s19, %s152_s19, %s153_s20  }
  0x23   :  { %145 = dma.done.wait [#allocation3], 512  }
  0x24   :  { %146 = vsyncadd [#allocation3], 4294966784 }
  0x25   :  { %147 = dma.done.wait [#allocation6], 512  }
  0x26   :  { %148 = vsyncadd [#allocation6], 4294966784  ;;  %v40_v0 = vld [vmem:[#allocation2] sm:$0xff]  ;;  %v41_v2 = vld [vmem:[#allocation2 + $0x8] sm:$0xff]  ;;  %s155_s6 = smov [#allocation7]  }
  0x27   :  { %v44_v1 = vld [vmem:[#allocation5] sm:$0xff]  ;;  %s61_s7 = sshll.u32 %s155_s6, 4  ;;  %v45_v4 = vld [vmem:[#allocation5 + $0x8] sm:$0xff]  ;;  %v42_v5 = vld [vmem:[#allocation2 + $0x10] sm:$0xff]  ;;  %s62_s7 = int_to_ptr.vmem [resolvable:$true] %s61_s7 }
  0x28   :  { %v48_v3 = vadd.f32 %v44_v1, %v40_v0  ;;  %v46_v6 = vld [vmem:[#allocation5 + $0x10] sm:$0xff]  ;;  %v49_v7 = vadd.f32 %v45_v4, %v41_v2  ;;  %v43_v9 = vld [vmem:[#allocation2 + $0x18] sm:$0xff]  ;;  %s123_s1 = scalar_lea.vmem %s62_s7, 512  ;;  %p128_p3 = scmp.lt.s32.totalorder %s62_s7, %s62_s7 }
  0x29   :  { %v50_v8 = vadd.f32 %v46_v6, %v42_v5  ;;  %v47_v10 = vld [vmem:[#allocation5 + $0x18] sm:$0xff]  ;;  %p124_p2 = scmp.ne.s32.totalorder %s62_s7, %s123_s1  ;;  %p129_p4 = scmp.lt.s32.totalorder %s123_s1, %s123_s1 }
  0x2a   :  { %52 = vst [vmem:[#allocation7] sm:$0xff] %v48_v3  ;;  %v51_v11 = vadd.f32 %v47_v10, %v43_v9  ;;  %53 = vst [vmem:[#allocation7 + $0x8] sm:$0xff] %v49_v7 }
  0x2b   :  { %54 = vst [vmem:[#allocation7 + $0x10] sm:$0xff] %v50_v8  ;;  %p130_p5 = por %p129_p4, %p128_p3 }
  0x2c   :  { %55 = vst [vmem:[#allocation7 + $0x18] sm:$0xff] %v51_v11 }
  0x2d   :  { %p131_p6 = pnand %p130_p5, %p124_p2 }
  0x2f   :  { %134 = shalt.err (!%p131_p6)
}
  0x30   :  { %s135_s10 = scalar_lea.hbm %s218_s2, 512 }
  0x31   :  { %p136_p7 = scmp.ne.s32.totalorder %s218_s2, %s135_s10  ;;  %p139_p8 = scmp.lt.u32.totalorder %s135_s10, %s218_s2 }
  0x33   :  { %p141_p9 = pnand %p139_p8, %p136_p7 }
  0x35   :  { %144 = shalt.err (!%p141_p9)
}
  0x36   :  { %67 = dma.vmem_to_hbm [thread:$0]  %s62_s7, 512, %s218_s2, [#allocation4], %s152_s19, %s152_s19, %s153_s20  }
  0x37   :  { %149 = dma.done.wait [#allocation4], 512  }
  0x38   :  { %150 = vsyncadd [#allocation4], 4294966784 }
  0x39   :  { %71 = vsyncpa [#allocation3], 1 }
  0x3a   :  { %72 = vsyncpa [#allocation6], 1 }
  0x3b   :  { %73 = vsyncpa [#allocation4], 1 }

</bundles_post_ra>
